<compile_context>
chip_gen: v7x
topology: tpu7x:2x2x1
jax: 0.10.0
libtpu: 0.0.40
codegen_flags: <defaults>
</compile_context>

<pallas_src>
import functools

import jax
import jax.numpy as jnp
from jax import lax
from jax.experimental import pallas as pl
from jax.experimental.pallas import tpu as pltpu


def _cdiv(a, b):
    return -(-a // b)


def _round_up(x, m):
    return ((x + m - 1) // m) * m


def _sf_rate_kernel(hA_ref, lA_ref, hB_ref, lB_ref, M_ref, t2_ref,
                    shh_ref, shl_ref, slh_ref, sll_ref, *, chunk):
    """Per-lane (per-molecule) bilinear contraction.

    Block layout (nmol tile on the lane axis):
      hA_ref, lA_ref : (naoA_blk, tile)
      hB_ref, lB_ref : (naoB,     tile)
      M_ref          : (naoA_blk, naoB, tile)
      t2_ref         : (1, tile)
      s??_ref        : (1, tile) f32 scratch accumulators (persist across the naoA grid axis)
    """
    k = pl.program_id(1)
    nk = pl.num_programs(1)
    naoA_blk = hA_ref.shape[0]
    naoB = hB_ref.shape[0]
    tn = t2_ref.shape[-1]
    n_chunks = tn // chunk
    unroll = True if naoA_blk <= 32 else 8

    @pl.when(k == 0)
    def _init():
        zero = jnp.zeros_like(shh_ref)
        shh_ref[...] = zero
        shl_ref[...] = zero
        slh_ref[...] = zero
        sll_ref[...] = zero

    def chunk_body(c, carry):
        if chunk % 128 == 0:
            off = pl.multiple_of(c * chunk, 128)
        else:
            off = c * chunk
        lanes = pl.ds(off, chunk)

        hB = hB_ref[:, lanes].astype(jnp.float32)        # (naoB, chunk)
        lB = lB_ref[:, lanes].astype(jnp.float32)

        def m_body(m, acc):
            T_h, T_l = acc
            Mm = M_ref[m, :, lanes].astype(jnp.float32)              # (naoB, chunk) — single M read
            hAm = hA_ref[pl.ds(m, 1), lanes].astype(jnp.float32)     # (1, chunk), sublane-broadcast
            lAm = lA_ref[pl.ds(m, 1), lanes].astype(jnp.float32)
            return (T_h + hAm * Mm, T_l + lAm * Mm)                  # pure VPU; no per-row XLU reduce

        zero = jnp.zeros((naoB, chunk), jnp.float32)
        T_h, T_l = lax.fori_loop(0, naoA_blk, m_body, (zero, zero), unroll=unroll)

        # the only cross-sublane (XLU) reductions: 4 per chunk, after the row loop
        shh_ref[:, lanes] += jnp.sum(T_h * hB, axis=0, keepdims=True)
        shl_ref[:, lanes] += jnp.sum(T_h * lB, axis=0, keepdims=True)
        slh_ref[:, lanes] += jnp.sum(T_l * hB, axis=0, keepdims=True)
        sll_ref[:, lanes] += jnp.sum(T_l * lB, axis=0, keepdims=True)
        return carry

    lax.fori_loop(0, n_chunks, chunk_body, 0)

    @pl.when(k == nk - 1)
    def _finalize():
        shh = shh_ref[...]
        shl = shl_ref[...]
        slh = slh_ref[...]
        sll = sll_ref[...]
        # t2 = (S_lh * S_ll - S_hl * S_hh)^2  — lane-dense (1, tile) store
        t2_ref[...] = ((slh * sll - shl * shh) ** 2).astype(t2_ref.dtype)


def singlet_fission_rate_pallas(hA, lA, hB, lB, M_AB, *, m_layout="lane_major"):
    """Compute |T_RP|^2 per molecule.

    hA, lA : (nmol, naoA);  hB, lB : (nmol, naoB)
    M_AB   : (naoA, naoB, nmol) if m_layout == 'lane_major'  (performance contract, f32 or bf16)
             (nmol, naoA, naoB) if m_layout == 'mol_major'   (torch layout; costs one transpose)
    Returns t2 : (nmol,) float32.
    """
    hA = jnp.asarray(hA, jnp.float32)
    lA = jnp.asarray(lA, jnp.float32)
    hB = jnp.asarray(hB, jnp.float32)
    lB = jnp.asarray(lB, jnp.float32)
    nmol, naoA = hA.shape
    naoB = hB.shape[1]

    if m_layout == "lane_major":
        assert M_AB.shape == (naoA, naoB, nmol), M_AB.shape
        M = M_AB
    elif m_layout == "mol_major":
        # Compatibility path: one extra full HBM pass over the dominant array.  Produce M in
        # (naoA, naoB, nmol) upstream to avoid it (this is the biggest single perf lever).
        assert M_AB.shape == (nmol, naoA, naoB), M_AB.shape
        M = jnp.transpose(M_AB, (1, 2, 0))
    else:
        raise ValueError(f"unknown m_layout {m_layout!r}")

    if M.dtype not in (jnp.dtype(jnp.float32), jnp.dtype(jnp.bfloat16)):
        M = M.astype(jnp.float32)
    m_itemsize = jnp.dtype(M.dtype).itemsize

    # small orbital arrays: nmol on the lane (last) axis; these are tiny, relayout is free
    hA_t, lA_t, hB_t, lB_t = hA.T, lA.T, hB.T, lB.T

    # ---- generation-aware sizing -----------------------------------------------------
    try:
        kind = jax.devices()[0].device_kind.lower()
    except Exception:  # pragma: no cover
        kind = ""
    big_vmem = any(t in kind for t in ("v4", "v5", "v6"))   # 128 MiB VMEM parts
    n_cores = 1 if big_vmem else 2                          # assume v7x (2 TCs) otherwise
    budget = (44 if big_vmem else 36) << 20                 # double-buffered block budget
    vmem_cap_limit = (96 if big_vmem else 48) << 20

    def per_lane_bytes(naoA_blk):
        return naoA_blk * naoB * m_itemsize + 4 * (2 * naoA_blk + 2 * naoB + 1)

    def step_vmem(tile_, naoA_blk):
        return 2 * tile_ * per_lane_bytes(naoA_blk) + 4 * 8 * tile_ * 4   # 2x-buffered blocks + scratch

    # in-kernel lane chunk: keep each (naoB, chunk) f32 slab to ~8 vregs
    sub_vregs = _cdiv(naoB, 8)
    chunk = max(128, min(512, (8 // sub_vregs) * 128))

    if nmol <= chunk:
        # single block: every block dim equals the full array dim (no (8,128) constraint,
        # no ragged blocks, no padding at all).
        tile = chunk = nmol
    else:
        max_tile = (budget // (2 * per_lane_bytes(naoA) + 128)) // chunk * chunk
        tile = min(8192,
                   max(chunk, max_tile),
                   _cdiv(nmol, chunk) * chunk,                   # no point exceeding nmol
                   _cdiv(_cdiv(nmol, n_cores), chunk) * chunk)   # >=2 grid steps for v7x megacore
        tile = max(chunk, tile)

    # AO-axis split: only when even the minimal lane tile would overflow the VMEM budget.
    nk, naoA_blk = 1, naoA
    if step_vmem(tile, naoA) > budget:
        while tile > chunk and step_vmem(tile, naoA) > budget:
            tile -= chunk
        if step_vmem(tile, naoA) > budget:
            blk = (budget // (2 * tile) - 4 * (2 * naoB + 1)) // (naoB * m_itemsize + 8)
            naoA_blk = max(8, int(blk) // 8 * 8)
            nk = _cdiv(naoA, naoA_blk)
            naoA_blk = _round_up(_cdiv(naoA, nk), 8)

    grid_j = _cdiv(nmol, tile)
    nmol_pad = grid_j * tile
    lane_pad = nmol_pad - nmol
    naoA_pad = nk * naoA_blk
    ao_pad = naoA_pad - naoA

    # Pad ONLY the small orbital arrays.  M is never padded along nmol: the last lane block
    # is ragged (bounded DMA); its out-of-range lanes give garbage t2 that is sliced off.
    if lane_pad or ao_pad:
        hA_t = jnp.pad(hA_t, ((0, ao_pad), (0, lane_pad)))
        lA_t = jnp.pad(lA_t, ((0, ao_pad), (0, lane_pad)))
    if lane_pad:
        hB_t = jnp.pad(hB_t, ((0, 0), (0, lane_pad)))
        lB_t = jnp.pad(lB_t, ((0, 0), (0, lane_pad)))
    if ao_pad:
        # Rare fallback (huge naoA*naoB): zero rows keep the reduction exact but cost one extra
        # HBM pass over M; provide naoA as a multiple of the AO block upstream to avoid it.
        M = jnp.pad(M, ((0, ao_pad), (0, 0), (0, 0)))

    vmem_need = step_vmem(tile, naoA_blk) + 2 * tile * 4 + (2 << 20)
    vmem_limit = int(min(vmem_cap_limit, max(vmem_need, 16 << 20)))

    cost = pl.CostEstimate(
        flops=8 * nmol * naoA * naoB,
        transcendentals=0,
        bytes_accessed=int(M.size * m_itemsize
                           + 4 * (hA_t.size + lA_t.size + hB_t.size + lB_t.size)
                           + 4 * nmol_pad),
    )

    t2 = pl.pallas_call(
        functools.partial(_sf_rate_kernel, chunk=chunk),
        out_shape=jax.ShapeDtypeStruct((1, nmol_pad), jnp.float32),
        grid_spec=pltpu.PrefetchScalarGridSpec(
            num_scalar_prefetch=0,
            grid=(grid_j, nk),
            in_specs=[
                pl.BlockSpec((naoA_blk, tile), lambda j, k: (k, j)),           # hA
                pl.BlockSpec((naoA_blk, tile), lambda j, k: (k, j)),           # lA
                pl.BlockSpec((naoB, tile), lambda j, k: (0, j)),               # hB
                pl.BlockSpec((naoB, tile), lambda j, k: (0, j)),               # lB
                pl.BlockSpec((naoA_blk, naoB, tile), lambda j, k: (k, 0, j)),  # M (S_AB / F_AB)
            ],
            out_specs=pl.BlockSpec((1, tile), lambda j, k: (0, j)),
            scratch_shapes=[pltpu.VMEM((1, tile), jnp.float32) for _ in range(4)],
        ),
        compiler_params=pltpu.CompilerParams(
            dimension_semantics=("parallel", "arbitrary"),
            vmem_limit_bytes=vmem_limit,
        ),
        cost_estimate=cost,
    )(hA_t, lA_t, hB_t, lB_t, M)

    return t2[0, :nmol]


class SingletFissionRate:
    """JAX/Pallas re-implementation of the |T_RP|^2 hot path of the PyTorch module.

    'overlap' and 'diabatic' use the same bilinear-contraction kernel, fed with either the
    AO overlap block S_AB or the Fock block F_AB (synthetic stand-ins in this script).
    """

    def __init__(self, approximation="overlap", exciton_state="both"):
        assert approximation in ["overlap", "diabatic", "non-adiabatic"]
        assert exciton_state in ["bright", "dark", "both"]
        if approximation == "non-adiabatic":
            # TODO(synk): 'non-adiabatic' branch (batched symeig + autograd NACs) not translatable.
            raise NotImplementedError("non-adiabatic branch has no Pallas equivalent")
        self.approximation = approximation
        self.exciton_state = exciton_state

    def forward(self, hA, lA, hB, lB, M_AB, m_layout="lane_major"):
        return singlet_fission_rate_pallas(hA, lA, hB, lB, M_AB, m_layout=m_layout)

    __call__ = forward


def _reference_t2(hA, lA, hB, lB, M_lane):
    """Plain-JAX reference mirroring the PyTorch double loop (M in (naoA, naoB, nmol))."""
    Shh = jnp.einsum("bm,mnb,bn->b", hA, M_lane, hB)
    Shl = jnp.einsum("bm,mnb,bn->b", hA, M_lane, lB)
    Slh = jnp.einsum("bm,mnb,bn->b", lA, M_lane, hB)
    Sll = jnp.einsum("bm,mnb,bn->b", lA, M_lane, lB)
    return (Slh * Sll - Shl * Shh) ** 2


def _build_synthetic_inputs(key, nmol, nA, nB):
    """Deterministic stand-ins for the SCF frontier orbitals and the S_AB overlap block."""
    naoA, naoB = 4 * nA, 4 * nB
    kcA, kcB, khA, klA, khB, klB = jax.random.split(key, 6)

    coords_A = 1.5 * jax.random.normal(kcA, (nmol, nA, 3), dtype=jnp.float32)
    coords_B = 1.5 * jax.random.normal(kcB, (nmol, nB, 3), dtype=jnp.float32) + jnp.array(
        [3.5, 0.0, 0.0], dtype=jnp.float32)

    def _orb(k, nao):
        v = jax.random.normal(k, (nmol, nao), dtype=jnp.float32)
        return v / jnp.linalg.norm(v, axis=1, keepdims=True)

    hA, lA = _orb(khA, naoA), _orb(klA, naoA)
    hB, lB = _orb(khB, naoB), _orb(klB, naoB)

    # Synthetic inter-monomer overlap block, built DIRECTLY in the kernel's (naoA,naoB,nmol)
    # performance layout (only the tiny per-atom matrix is transposed): Gaussian atom-pair
    # overlap tiled to 4x4 valence-orbital blocks.
    d2 = jnp.sum((coords_A[:, :, None, :] - coords_B[:, None, :, :]) ** 2, axis=-1)  # (nmol,nA,nB)
    atom_overlap = jnp.transpose(jnp.exp(-0.25 * d2), (1, 2, 0))                     # (nA,nB,nmol)
    orb_factor = jnp.eye(4, dtype=jnp.float32) + 0.1                                 # (4,4)
    S_lane = (atom_overlap[:, None, :, None, :]
              * orb_factor[None, :, None, :, None]).reshape(naoA, naoB, nmol)
    return hA, lA, hB, lB, S_lane


if __name__ == "__main__":
    model = SingletFissionRate(approximation="overlap")
    k1, k2 = jax.random.split(jax.random.PRNGKey(0), 2)

    # ---- case 1: tiny batch (single-block fast path), f32 and bf16 M -------------------
    hA, lA, hB, lB, S = _build_synthetic_inputs(k1, nmol=2, nA=4, nB=4)
    t2 = jax.block_until_ready(model(hA, lA, hB, lB, S))
    t2_ref = _reference_t2(hA, lA, hB, lB, S)
    assert t2.shape == (2,)
    assert jnp.allclose(t2, t2_ref, rtol=2e-4, atol=1e-5), (t2, t2_ref)

    S_bf16 = S.astype(jnp.bfloat16)   # halves HBM traffic of the dominant array
    t2_bf = jax.block_until_ready(model(hA, lA, hB, lB, S_bf16))
    t2_bf_ref = _reference_t2(hA, lA, hB, lB, S_bf16.astype(jnp.float32))
    assert jnp.allclose(t2_bf, t2_bf_ref, rtol=1e-3, atol=1e-5), (t2_bf, t2_bf_ref)

    # ---- case 2: larger batch exercising the lane-tiled grid / chunk loop / ragged tail -
    hA2, lA2, hB2, lB2, S2 = _build_synthetic_inputs(k2, nmol=600, nA=6, nB=6)
    t2b = jax.block_until_ready(model(hA2, lA2, hB2, lB2, S2))
    t2b_ref = _reference_t2(hA2, lA2, hB2, lB2, S2)
    assert t2b.shape == (600,)
    assert jnp.allclose(t2b, t2b_ref, rtol=2e-4, atol=2e-5), "large-batch mismatch"

    print("KERNEL_OK")
</pallas_src>

<mosaic_0001>
module attributes {stable_mosaic.version = 11 : i64} {
  func.func @_sf_rate_kernel(%arg0: i32, %arg1: i32, %arg2: memref<16x2xf32, #tpu.memory_space<vmem>>, %arg3: memref<16x2xf32, #tpu.memory_space<vmem>>, %arg4: memref<16x2xf32, #tpu.memory_space<vmem>>, %arg5: memref<16x2xf32, #tpu.memory_space<vmem>>, %arg6: memref<16x16x2xf32, #tpu.memory_space<vmem>>, %arg7: memref<1x2xf32, #tpu.memory_space<vmem>>, %arg8: memref<1x2xf32, #tpu.memory_space<vmem>>, %arg9: memref<1x2xf32, #tpu.memory_space<vmem>>, %arg10: memref<1x2xf32, #tpu.memory_space<vmem>>, %arg11: memref<1x2xf32, #tpu.memory_space<vmem>>) attributes {dimension_semantics = [#tpu.dimension_semantics<parallel>, #tpu.dimension_semantics<arbitrary>], iteration_bounds = array<i64: 1, 1>, scalar_prefetch = 0 : i64, scratch_operands = 4 : i64, tpu.core_type = #tpu.core_type<tc>, window_params = [{transform_indices = @transform_0, window_bounds = array<i64: 16, 2>}, {transform_indices = @transform_1, window_bounds = array<i64: 16, 2>}, {transform_indices = @transform_2, window_bounds = array<i64: 16, 2>}, {transform_indices = @transform_3, window_bounds = array<i64: 16, 2>}, {transform_indices = @transform_4, window_bounds = array<i64: 16, 16, 2>}, {transform_indices = @transform_5, window_bounds = array<i64: 1, 2>}]} {
    %c0_i32 = arith.constant 0 : i32
    %0 = arith.cmpi eq, %arg1, %c0_i32 : i32
    %1 = arith.extui %0 : i1 to i32
    %c0_i32_0 = arith.constant 0 : i32
    %2 = arith.cmpi ne, %1, %c0_i32_0 : i32
    scf.if %2 {
      %cst_36 = arith.constant 0.000000e+00 : f32
      %300 = vector.broadcast %cst_36 : f32 to vector<1x2xf32>
      %c0_37 = arith.constant 0 : index
      %c0_38 = arith.constant 0 : index
      %301 = vector.load %arg8[%c0_37, %c0_38] : memref<1x2xf32, #tpu.memory_space<vmem>>, vector<1x2xf32>
      tpu.vector_store %arg8[%c0_37, %c0_38], %300 {strides = array<i32>} : memref<1x2xf32, #tpu.memory_space<vmem>>, vector<1x2xf32>,
      %c0_39 = arith.constant 0 : index
      %c0_40 = arith.constant 0 : index
      %302 = vector.load %arg9[%c0_39, %c0_40] : memref<1x2xf32, #tpu.memory_space<vmem>>, vector<1x2xf32>
      tpu.vector_store %arg9[%c0_39, %c0_40], %300 {strides = array<i32>} : memref<1x2xf32, #tpu.memory_space<vmem>>, vector<1x2xf32>,
      %c0_41 = arith.constant 0 : index
      %c0_42 = arith.constant 0 : index
      %303 = vector.load %arg10[%c0_41, %c0_42] : memref<1x2xf32, #tpu.memory_space<vmem>>, vector<1x2xf32>
      tpu.vector_store %arg10[%c0_41, %c0_42], %300 {strides = array<i32>} : memref<1x2xf32, #tpu.memory_space<vmem>>, vector<1x2xf32>,
      %c0_43 = arith.constant 0 : index
      %c0_44 = arith.constant 0 : index
      %304 = vector.load %arg11[%c0_43, %c0_44] : memref<1x2xf32, #tpu.memory_space<vmem>>, vector<1x2xf32>
      tpu.vector_store %arg11[%c0_43, %c0_44], %300 {strides = array<i32>} : memref<1x2xf32, #tpu.memory_space<vmem>>, vector<1x2xf32>,
    } else {
    }
    %c0_i32_1 = arith.constant 0 : i32
    %c2_i32 = arith.constant 2 : i32
    %3 = arith.muli %c0_i32_1, %c2_i32 : i32
    %c0 = arith.constant 0 : index
    %4 = arith.index_cast %3 : i32 to index
    %5 = vector.load %arg4[%c0, %4] : memref<16x2xf32, #tpu.memory_space<vmem>>, vector<16x2xf32>
    %c0_2 = arith.constant 0 : index
    %6 = arith.index_cast %3 : i32 to index
    %7 = vector.load %arg5[%c0_2, %6] : memref<16x2xf32, #tpu.memory_space<vmem>>, vector<16x2xf32>
    %cst = arith.constant 0.000000e+00 : f32
    %8 = vector.broadcast %cst : f32 to vector<16x2xf32>
    %c0_i32_3 = arith.constant 0 : i32
    %9 = arith.index_cast %c0_i32_3 : i32 to index
    %c0_4 = arith.constant 0 : index
    %10 = arith.index_cast %3 : i32 to index
    %11 = vector.load %arg6[%9, %c0_4, %10] : memref<16x16x2xf32, #tpu.memory_space<vmem>>, vector<1x16x2xf32>
    %12 = vector.shape_cast %11 : vector<1x16x2xf32> to vector<16x2xf32>
    %13 = arith.index_cast %c0_i32_3 : i32 to index
    %14 = arith.index_cast %3 : i32 to index
    %15 = vector.load %arg2[%13, %14] : memref<16x2xf32, #tpu.memory_space<vmem>>, vector<1x2xf32>
    %16 = arith.index_cast %c0_i32_3 : i32 to index
    %17 = arith.index_cast %3 : i32 to index
    %18 = vector.load %arg3[%16, %17] : memref<16x2xf32, #tpu.memory_space<vmem>>, vector<1x2xf32>
    %19 = vector.broadcast %15 : vector<1x2xf32> to vector<16x2xf32>
    %20 = arith.mulf %19, %12 : vector<16x2xf32>
    %21 = arith.addf %8, %20 : vector<16x2xf32>
    %22 = vector.broadcast %18 : vector<1x2xf32> to vector<16x2xf32>
    %23 = arith.mulf %22, %12 : vector<16x2xf32>
    %24 = arith.addf %8, %23 : vector<16x2xf32>
    %c1_i32 = arith.constant 1 : i32
    %25 = arith.index_cast %c1_i32 : i32 to index
    %c0_5 = arith.constant 0 : index
    %26 = arith.index_cast %3 : i32 to index
    %27 = vector.load %arg6[%25, %c0_5, %26] : memref<16x16x2xf32, #tpu.memory_space<vmem>>, vector<1x16x2xf32>
    %28 = vector.shape_cast %27 : vector<1x16x2xf32> to vector<16x2xf32>
    %29 = arith.index_cast %c1_i32 : i32 to index
    %30 = arith.index_cast %3 : i32 to index
    %31 = vector.load %arg2[%29, %30] : memref<16x2xf32, #tpu.memory_space<vmem>>, vector<1x2xf32>
    %32 = arith.index_cast %c1_i32 : i32 to index
    %33 = arith.index_cast %3 : i32 to index
    %34 = vector.load %arg3[%32, %33] : memref<16x2xf32, #tpu.memory_space<vmem>>, vector<1x2xf32>
    %35 = vector.broadcast %31 : vector<1x2xf32> to vector<16x2xf32>
    %36 = arith.mulf %35, %28 : vector<16x2xf32>
    %37 = arith.addf %21, %36 : vector<16x2xf32>
    %38 = vector.broadcast %34 : vector<1x2xf32> to vector<16x2xf32>
    %39 = arith.mulf %38, %28 : vector<16x2xf32>
    %40 = arith.addf %24, %39 : vector<16x2xf32>
    %c2_i32_6 = arith.constant 2 : i32
    %41 = arith.index_cast %c2_i32_6 : i32 to index
    %c0_7 = arith.constant 0 : index
    %42 = arith.index_cast %3 : i32 to index
    %43 = vector.load %arg6[%41, %c0_7, %42] : memref<16x16x2xf32, #tpu.memory_space<vmem>>, vector<1x16x2xf32>
    %44 = vector.shape_cast %43 : vector<1x16x2xf32> to vector<16x2xf32>
    %45 = arith.index_cast %c2_i32_6 : i32 to index
    %46 = arith.index_cast %3 : i32 to index
    %47 = vector.load %arg2[%45, %46] : memref<16x2xf32, #tpu.memory_space<vmem>>, vector<1x2xf32>
    %48 = arith.index_cast %c2_i32_6 : i32 to index
    %49 = arith.index_cast %3 : i32 to index
    %50 = vector.load %arg3[%48, %49] : memref<16x2xf32, #tpu.memory_space<vmem>>, vector<1x2xf32>
    %51 = vector.broadcast %47 : vector<1x2xf32> to vector<16x2xf32>
    %52 = arith.mulf %51, %44 : vector<16x2xf32>
    %53 = arith.addf %37, %52 : vector<16x2xf32>
    %54 = vector.broadcast %50 : vector<1x2xf32> to vector<16x2xf32>
    %55 = arith.mulf %54, %44 : vector<16x2xf32>
    %56 = arith.addf %40, %55 : vector<16x2xf32>
    %c3_i32 = arith.constant 3 : i32
    %57 = arith.index_cast %c3_i32 : i32 to index
    %c0_8 = arith.constant 0 : index
    %58 = arith.index_cast %3 : i32 to index
    %59 = vector.load %arg6[%57, %c0_8, %58] : memref<16x16x2xf32, #tpu.memory_space<vmem>>, vector<1x16x2xf32>
    %60 = vector.shape_cast %59 : vector<1x16x2xf32> to vector<16x2xf32>
    %61 = arith.index_cast %c3_i32 : i32 to index
    %62 = arith.index_cast %3 : i32 to index
    %63 = vector.load %arg2[%61, %62] : memref<16x2xf32, #tpu.memory_space<vmem>>, vector<1x2xf32>
    %64 = arith.index_cast %c3_i32 : i32 to index
    %65 = arith.index_cast %3 : i32 to index
    %66 = vector.load %arg3[%64, %65] : memref<16x2xf32, #tpu.memory_space<vmem>>, vector<1x2xf32>
    %67 = vector.broadcast %63 : vector<1x2xf32> to vector<16x2xf32>
    %68 = arith.mulf %67, %60 : vector<16x2xf32>
    %69 = arith.addf %53, %68 : vector<16x2xf32>
    %70 = vector.broadcast %66 : vector<1x2xf32> to vector<16x2xf32>
    %71 = arith.mulf %70, %60 : vector<16x2xf32>
    %72 = arith.addf %56, %71 : vector<16x2xf32>
    %c4_i32 = arith.constant 4 : i32
    %73 = arith.index_cast %c4_i32 : i32 to index
    %c0_9 = arith.constant 0 : index
    %74 = arith.index_cast %3 : i32 to index
    %75 = vector.load %arg6[%73, %c0_9, %74] : memref<16x16x2xf32, #tpu.memory_space<vmem>>, vector<1x16x2xf32>
    %76 = vector.shape_cast %75 : vector<1x16x2xf32> to vector<16x2xf32>
    %77 = arith.index_cast %c4_i32 : i32 to index
    %78 = arith.index_cast %3 : i32 to index
    %79 = vector.load %arg2[%77, %78] : memref<16x2xf32, #tpu.memory_space<vmem>>, vector<1x2xf32>
    %80 = arith.index_cast %c4_i32 : i32 to index
    %81 = arith.index_cast %3 : i32 to index
    %82 = vector.load %arg3[%80, %81] : memref<16x2xf32, #tpu.memory_space<vmem>>, vector<1x2xf32>
    %83 = vector.broadcast %79 : vector<1x2xf32> to vector<16x2xf32>
    %84 = arith.mulf %83, %76 : vector<16x2xf32>
    %85 = arith.addf %69, %84 : vector<16x2xf32>
    %86 = vector.broadcast %82 : vector<1x2xf32> to vector<16x2xf32>
    %87 = arith.mulf %86, %76 : vector<16x2xf32>
    %88 = arith.addf %72, %87 : vector<16x2xf32>
    %c5_i32 = arith.constant 5 : i32
    %89 = arith.index_cast %c5_i32 : i32 to index
    %c0_10 = arith.constant 0 : index
    %90 = arith.index_cast %3 : i32 to index
    %91 = vector.load %arg6[%89, %c0_10, %90] : memref<16x16x2xf32, #tpu.memory_space<vmem>>, vector<1x16x2xf32>
    %92 = vector.shape_cast %91 : vector<1x16x2xf32> to vector<16x2xf32>
    %93 = arith.index_cast %c5_i32 : i32 to index
    %94 = arith.index_cast %3 : i32 to index
    %95 = vector.load %arg2[%93, %94] : memref<16x2xf32, #tpu.memory_space<vmem>>, vector<1x2xf32>
    %96 = arith.index_cast %c5_i32 : i32 to index
    %97 = arith.index_cast %3 : i32 to index
    %98 = vector.load %arg3[%96, %97] : memref<16x2xf32, #tpu.memory_space<vmem>>, vector<1x2xf32>
    %99 = vector.broadcast %95 : vector<1x2xf32> to vector<16x2xf32>
    %100 = arith.mulf %99, %92 : vector<16x2xf32>
    %101 = arith.addf %85, %100 : vector<16x2xf32>
    %102 = vector.broadcast %98 : vector<1x2xf32> to vector<16x2xf32>
    %103 = arith.mulf %102, %92 : vector<16x2xf32>
    %104 = arith.addf %88, %103 : vector<16x2xf32>
    %c6_i32 = arith.constant 6 : i32
    %105 = arith.index_cast %c6_i32 : i32 to index
    %c0_11 = arith.constant 0 : index
    %106 = arith.index_cast %3 : i32 to index
    %107 = vector.load %arg6[%105, %c0_11, %106] : memref<16x16x2xf32, #tpu.memory_space<vmem>>, vector<1x16x2xf32>
    %108 = vector.shape_cast %107 : vector<1x16x2xf32> to vector<16x2xf32>
    %109 = arith.index_cast %c6_i32 : i32 to index
    %110 = arith.index_cast %3 : i32 to index
    %111 = vector.load %arg2[%109, %110] : memref<16x2xf32, #tpu.memory_space<vmem>>, vector<1x2xf32>
    %112 = arith.index_cast %c6_i32 : i32 to index
    %113 = arith.index_cast %3 : i32 to index
    %114 = vector.load %arg3[%112, %113] : memref<16x2xf32, #tpu.memory_space<vmem>>, vector<1x2xf32>
    %115 = vector.broadcast %111 : vector<1x2xf32> to vector<16x2xf32>
    %116 = arith.mulf %115, %108 : vector<16x2xf32>
    %117 = arith.addf %101, %116 : vector<16x2xf32>
    %118 = vector.broadcast %114 : vector<1x2xf32> to vector<16x2xf32>
    %119 = arith.mulf %118, %108 : vector<16x2xf32>
    %120 = arith.addf %104, %119 : vector<16x2xf32>
    %c7_i32 = arith.constant 7 : i32
    %121 = arith.index_cast %c7_i32 : i32 to index
    %c0_12 = arith.constant 0 : index
    %122 = arith.index_cast %3 : i32 to index
    %123 = vector.load %arg6[%121, %c0_12, %122] : memref<16x16x2xf32, #tpu.memory_space<vmem>>, vector<1x16x2xf32>
    %124 = vector.shape_cast %123 : vector<1x16x2xf32> to vector<16x2xf32>
    %125 = arith.index_cast %c7_i32 : i32 to index
    %126 = arith.index_cast %3 : i32 to index
    %127 = vector.load %arg2[%125, %126] : memref<16x2xf32, #tpu.memory_space<vmem>>, vector<1x2xf32>
    %128 = arith.index_cast %c7_i32 : i32 to index
    %129 = arith.index_cast %3 : i32 to index
    %130 = vector.load %arg3[%128, %129] : memref<16x2xf32, #tpu.memory_space<vmem>>, vector<1x2xf32>
    %131 = vector.broadcast %127 : vector<1x2xf32> to vector<16x2xf32>
    %132 = arith.mulf %131, %124 : vector<16x2xf32>
    %133 = arith.addf %117, %132 : vector<16x2xf32>
    %134 = vector.broadcast %130 : vector<1x2xf32> to vector<16x2xf32>
    %135 = arith.mulf %134, %124 : vector<16x2xf32>
    %136 = arith.addf %120, %135 : vector<16x2xf32>
    %c8_i32 = arith.constant 8 : i32
    %137 = arith.index_cast %c8_i32 : i32 to index
    %c0_13 = arith.constant 0 : index
    %138 = arith.index_cast %3 : i32 to index
    %139 = vector.load %arg6[%137, %c0_13, %138] : memref<16x16x2xf32, #tpu.memory_space<vmem>>, vector<1x16x2xf32>
    %140 = vector.shape_cast %139 : vector<1x16x2xf32> to vector<16x2xf32>
    %141 = arith.index_cast %c8_i32 : i32 to index
    %142 = arith.index_cast %3 : i32 to index
    %143 = vector.load %arg2[%141, %142] : memref<16x2xf32, #tpu.memory_space<vmem>>, vector<1x2xf32>
    %144 = arith.index_cast %c8_i32 : i32 to index
    %145 = arith.index_cast %3 : i32 to index
    %146 = vector.load %arg3[%144, %145] : memref<16x2xf32, #tpu.memory_space<vmem>>, vector<1x2xf32>
    %147 = vector.broadcast %143 : vector<1x2xf32> to vector<16x2xf32>
    %148 = arith.mulf %147, %140 : vector<16x2xf32>
    %149 = arith.addf %133, %148 : vector<16x2xf32>
    %150 = vector.broadcast %146 : vector<1x2xf32> to vector<16x2xf32>
    %151 = arith.mulf %150, %140 : vector<16x2xf32>
    %152 = arith.addf %136, %151 : vector<16x2xf32>
    %c9_i32 = arith.constant 9 : i32
    %153 = arith.index_cast %c9_i32 : i32 to index
    %c0_14 = arith.constant 0 : index
    %154 = arith.index_cast %3 : i32 to index
    %155 = vector.load %arg6[%153, %c0_14, %154] : memref<16x16x2xf32, #tpu.memory_space<vmem>>, vector<1x16x2xf32>
    %156 = vector.shape_cast %155 : vector<1x16x2xf32> to vector<16x2xf32>
    %157 = arith.index_cast %c9_i32 : i32 to index
    %158 = arith.index_cast %3 : i32 to index
    %159 = vector.load %arg2[%157, %158] : memref<16x2xf32, #tpu.memory_space<vmem>>, vector<1x2xf32>
    %160 = arith.index_cast %c9_i32 : i32 to index
    %161 = arith.index_cast %3 : i32 to index
    %162 = vector.load %arg3[%160, %161] : memref<16x2xf32, #tpu.memory_space<vmem>>, vector<1x2xf32>
    %163 = vector.broadcast %159 : vector<1x2xf32> to vector<16x2xf32>
    %164 = arith.mulf %163, %156 : vector<16x2xf32>
    %165 = arith.addf %149, %164 : vector<16x2xf32>
    %166 = vector.broadcast %162 : vector<1x2xf32> to vector<16x2xf32>
    %167 = arith.mulf %166, %156 : vector<16x2xf32>
    %168 = arith.addf %152, %167 : vector<16x2xf32>
    %c10_i32 = arith.constant 10 : i32
    %169 = arith.index_cast %c10_i32 : i32 to index
    %c0_15 = arith.constant 0 : index
    %170 = arith.index_cast %3 : i32 to index
    %171 = vector.load %arg6[%169, %c0_15, %170] : memref<16x16x2xf32, #tpu.memory_space<vmem>>, vector<1x16x2xf32>
    %172 = vector.shape_cast %171 : vector<1x16x2xf32> to vector<16x2xf32>
    %173 = arith.index_cast %c10_i32 : i32 to index
    %174 = arith.index_cast %3 : i32 to index
    %175 = vector.load %arg2[%173, %174] : memref<16x2xf32, #tpu.memory_space<vmem>>, vector<1x2xf32>
    %176 = arith.index_cast %c10_i32 : i32 to index
    %177 = arith.index_cast %3 : i32 to index
    %178 = vector.load %arg3[%176, %177] : memref<16x2xf32, #tpu.memory_space<vmem>>, vector<1x2xf32>
    %179 = vector.broadcast %175 : vector<1x2xf32> to vector<16x2xf32>
    %180 = arith.mulf %179, %172 : vector<16x2xf32>
    %181 = arith.addf %165, %180 : vector<16x2xf32>
    %182 = vector.broadcast %178 : vector<1x2xf32> to vector<16x2xf32>
    %183 = arith.mulf %182, %172 : vector<16x2xf32>
    %184 = arith.addf %168, %183 : vector<16x2xf32>
    %c11_i32 = arith.constant 11 : i32
    %185 = arith.index_cast %c11_i32 : i32 to index
    %c0_16 = arith.constant 0 : index
    %186 = arith.index_cast %3 : i32 to index
    %187 = vector.load %arg6[%185, %c0_16, %186] : memref<16x16x2xf32, #tpu.memory_space<vmem>>, vector<1x16x2xf32>
    %188 = vector.shape_cast %187 : vector<1x16x2xf32> to vector<16x2xf32>
    %189 = arith.index_cast %c11_i32 : i32 to index
    %190 = arith.index_cast %3 : i32 to index
    %191 = vector.load %arg2[%189, %190] : memref<16x2xf32, #tpu.memory_space<vmem>>, vector<1x2xf32>
    %192 = arith.index_cast %c11_i32 : i32 to index
    %193 = arith.index_cast %3 : i32 to index
    %194 = vector.load %arg3[%192, %193] : memref<16x2xf32, #tpu.memory_space<vmem>>, vector<1x2xf32>
    %195 = vector.broadcast %191 : vector<1x2xf32> to vector<16x2xf32>
    %196 = arith.mulf %195, %188 : vector<16x2xf32>
    %197 = arith.addf %181, %196 : vector<16x2xf32>
    %198 = vector.broadcast %194 : vector<1x2xf32> to vector<16x2xf32>
    %199 = arith.mulf %198, %188 : vector<16x2xf32>
    %200 = arith.addf %184, %199 : vector<16x2xf32>
    %c12_i32 = arith.constant 12 : i32
    %201 = arith.index_cast %c12_i32 : i32 to index
    %c0_17 = arith.constant 0 : index
    %202 = arith.index_cast %3 : i32 to index
    %203 = vector.load %arg6[%201, %c0_17, %202] : memref<16x16x2xf32, #tpu.memory_space<vmem>>, vector<1x16x2xf32>
    %204 = vector.shape_cast %203 : vector<1x16x2xf32> to vector<16x2xf32>
    %205 = arith.index_cast %c12_i32 : i32 to index
    %206 = arith.index_cast %3 : i32 to index
    %207 = vector.load %arg2[%205, %206] : memref<16x2xf32, #tpu.memory_space<vmem>>, vector<1x2xf32>
    %208 = arith.index_cast %c12_i32 : i32 to index
    %209 = arith.index_cast %3 : i32 to index
    %210 = vector.load %arg3[%208, %209] : memref<16x2xf32, #tpu.memory_space<vmem>>, vector<1x2xf32>
    %211 = vector.broadcast %207 : vector<1x2xf32> to vector<16x2xf32>
    %212 = arith.mulf %211, %204 : vector<16x2xf32>
    %213 = arith.addf %197, %212 : vector<16x2xf32>
    %214 = vector.broadcast %210 : vector<1x2xf32> to vector<16x2xf32>
    %215 = arith.mulf %214, %204 : vector<16x2xf32>
    %216 = arith.addf %200, %215 : vector<16x2xf32>
    %c13_i32 = arith.constant 13 : i32
    %217 = arith.index_cast %c13_i32 : i32 to index
    %c0_18 = arith.constant 0 : index
    %218 = arith.index_cast %3 : i32 to index
    %219 = vector.load %arg6[%217, %c0_18, %218] : memref<16x16x2xf32, #tpu.memory_space<vmem>>, vector<1x16x2xf32>
    %220 = vector.shape_cast %219 : vector<1x16x2xf32> to vector<16x2xf32>
    %221 = arith.index_cast %c13_i32 : i32 to index
    %222 = arith.index_cast %3 : i32 to index
    %223 = vector.load %arg2[%221, %222] : memref<16x2xf32, #tpu.memory_space<vmem>>, vector<1x2xf32>
    %224 = arith.index_cast %c13_i32 : i32 to index
    %225 = arith.index_cast %3 : i32 to index
    %226 = vector.load %arg3[%224, %225] : memref<16x2xf32, #tpu.memory_space<vmem>>, vector<1x2xf32>
    %227 = vector.broadcast %223 : vector<1x2xf32> to vector<16x2xf32>
    %228 = arith.mulf %227, %220 : vector<16x2xf32>
    %229 = arith.addf %213, %228 : vector<16x2xf32>
    %230 = vector.broadcast %226 : vector<1x2xf32> to vector<16x2xf32>
    %231 = arith.mulf %230, %220 : vector<16x2xf32>
    %232 = arith.addf %216, %231 : vector<16x2xf32>
    %c14_i32 = arith.constant 14 : i32
    %233 = arith.index_cast %c14_i32 : i32 to index
    %c0_19 = arith.constant 0 : index
    %234 = arith.index_cast %3 : i32 to index
    %235 = vector.load %arg6[%233, %c0_19, %234] : memref<16x16x2xf32, #tpu.memory_space<vmem>>, vector<1x16x2xf32>
    %236 = vector.shape_cast %235 : vector<1x16x2xf32> to vector<16x2xf32>
    %237 = arith.index_cast %c14_i32 : i32 to index
    %238 = arith.index_cast %3 : i32 to index
    %239 = vector.load %arg2[%237, %238] : memref<16x2xf32, #tpu.memory_space<vmem>>, vector<1x2xf32>
    %240 = arith.index_cast %c14_i32 : i32 to index
    %241 = arith.index_cast %3 : i32 to index
    %242 = vector.load %arg3[%240, %241] : memref<16x2xf32, #tpu.memory_space<vmem>>, vector<1x2xf32>
    %243 = vector.broadcast %239 : vector<1x2xf32> to vector<16x2xf32>
    %244 = arith.mulf %243, %236 : vector<16x2xf32>
    %245 = arith.addf %229, %244 : vector<16x2xf32>
    %246 = vector.broadcast %242 : vector<1x2xf32> to vector<16x2xf32>
    %247 = arith.mulf %246, %236 : vector<16x2xf32>
    %248 = arith.addf %232, %247 : vector<16x2xf32>
    %c15_i32 = arith.constant 15 : i32
    %249 = arith.index_cast %c15_i32 : i32 to index
    %c0_20 = arith.constant 0 : index
    %250 = arith.index_cast %3 : i32 to index
    %251 = vector.load %arg6[%249, %c0_20, %250] : memref<16x16x2xf32, #tpu.memory_space<vmem>>, vector<1x16x2xf32>
    %252 = vector.shape_cast %251 : vector<1x16x2xf32> to vector<16x2xf32>
    %253 = arith.index_cast %c15_i32 : i32 to index
    %254 = arith.index_cast %3 : i32 to index
    %255 = vector.load %arg2[%253, %254] : memref<16x2xf32, #tpu.memory_space<vmem>>, vector<1x2xf32>
    %256 = arith.index_cast %c15_i32 : i32 to index
    %257 = arith.index_cast %3 : i32 to index
    %258 = vector.load %arg3[%256, %257] : memref<16x2xf32, #tpu.memory_space<vmem>>, vector<1x2xf32>
    %259 = vector.broadcast %255 : vector<1x2xf32> to vector<16x2xf32>
    %260 = arith.mulf %259, %252 : vector<16x2xf32>
    %261 = arith.addf %245, %260 : vector<16x2xf32>
    %262 = vector.broadcast %258 : vector<1x2xf32> to vector<16x2xf32>
    %263 = arith.mulf %262, %252 : vector<16x2xf32>
    %264 = arith.addf %248, %263 : vector<16x2xf32>
    %c16_i32 = arith.constant 16 : i32
    %c0_21 = arith.constant 0 : index
    %265 = arith.index_cast %3 : i32 to index
    %266 = vector.load %arg8[%c0_21, %265] : memref<1x2xf32, #tpu.memory_space<vmem>>, vector<1x2xf32>
    %267 = arith.mulf %261, %5 : vector<16x2xf32>
    %cst_22 = arith.constant dense<0.000000e+00> : vector<2xf32>
    %268 = vector.multi_reduction <add>, %267, %cst_22 [0] : vector<16x2xf32> to vector<2xf32>
    %269 = vector.shape_cast %268 : vector<2xf32> to vector<1x2xf32>
    %270 = arith.addf %266, %269 : vector<1x2xf32>
    %c0_23 = arith.constant 0 : index
    %271 = arith.index_cast %3 : i32 to index
    %272 = vector.load %arg8[%c0_23, %271] : memref<1x2xf32, #tpu.memory_space<vmem>>, vector<1x2xf32>
    tpu.vector_store %arg8[%c0_23, %271], %270 {strides = array<i32>} : memref<1x2xf32, #tpu.memory_space<vmem>>, vector<1x2xf32>,
    %c0_24 = arith.constant 0 : index
    %273 = arith.index_cast %3 : i32 to index
    %274 = vector.load %arg9[%c0_24, %273] : memref<1x2xf32, #tpu.memory_space<vmem>>, vector<1x2xf32>
    %275 = arith.mulf %261, %7 : vector<16x2xf32>
    %cst_25 = arith.constant dense<0.000000e+00> : vector<2xf32>
    %276 = vector.multi_reduction <add>, %275, %cst_25 [0] : vector<16x2xf32> to vector<2xf32>
    %277 = vector.shape_cast %276 : vector<2xf32> to vector<1x2xf32>
    %278 = arith.addf %274, %277 : vector<1x2xf32>
    %c0_26 = arith.constant 0 : index
    %279 = arith.index_cast %3 : i32 to index
    %280 = vector.load %arg9[%c0_26, %279] : memref<1x2xf32, #tpu.memory_space<vmem>>, vector<1x2xf32>
    tpu.vector_store %arg9[%c0_26, %279], %278 {strides = array<i32>} : memref<1x2xf32, #tpu.memory_space<vmem>>, vector<1x2xf32>,
    %c0_27 = arith.constant 0 : index
    %281 = arith.index_cast %3 : i32 to index
    %282 = vector.load %arg10[%c0_27, %281] : memref<1x2xf32, #tpu.memory_space<vmem>>, vector<1x2xf32>
    %283 = arith.mulf %264, %5 : vector<16x2xf32>
    %cst_28 = arith.constant dense<0.000000e+00> : vector<2xf32>
    %284 = vector.multi_reduction <add>, %283, %cst_28 [0] : vector<16x2xf32> to vector<2xf32>
    %285 = vector.shape_cast %284 : vector<2xf32> to vector<1x2xf32>
    %286 = arith.addf %282, %285 : vector<1x2xf32>
    %c0_29 = arith.constant 0 : index
    %287 = arith.index_cast %3 : i32 to index
    %288 = vector.load %arg10[%c0_29, %287] : memref<1x2xf32, #tpu.memory_space<vmem>>, vector<1x2xf32>
    tpu.vector_store %arg10[%c0_29, %287], %286 {strides = array<i32>} : memref<1x2xf32, #tpu.memory_space<vmem>>, vector<1x2xf32>,
    %c0_30 = arith.constant 0 : index
    %289 = arith.index_cast %3 : i32 to index
    %290 = vector.load %arg11[%c0_30, %289] : memref<1x2xf32, #tpu.memory_space<vmem>>, vector<1x2xf32>
    %291 = arith.mulf %264, %7 : vector<16x2xf32>
    %cst_31 = arith.constant dense<0.000000e+00> : vector<2xf32>
    %292 = vector.multi_reduction <add>, %291, %cst_31 [0] : vector<16x2xf32> to vector<2xf32>
    %293 = vector.shape_cast %292 : vector<2xf32> to vector<1x2xf32>
    %294 = arith.addf %290, %293 : vector<1x2xf32>
    %c0_32 = arith.constant 0 : index
    %295 = arith.index_cast %3 : i32 to index
    %296 = vector.load %arg11[%c0_32, %295] : memref<1x2xf32, #tpu.memory_space<vmem>>, vector<1x2xf32>
    tpu.vector_store %arg11[%c0_32, %295], %294 {strides = array<i32>} : memref<1x2xf32, #tpu.memory_space<vmem>>, vector<1x2xf32>,
    %c1_i32_33 = arith.constant 1 : i32
    %c0_i32_34 = arith.constant 0 : i32
    %297 = arith.cmpi eq, %arg1, %c0_i32_34 : i32
    %298 = arith.extui %297 : i1 to i32
    %c0_i32_35 = arith.constant 0 : i32
    %299 = arith.cmpi ne, %298, %c0_i32_35 : i32
    scf.if %299 {
      %c0_36 = arith.constant 0 : index
      %c0_37 = arith.constant 0 : index
      %300 = vector.load %arg8[%c0_36, %c0_37] : memref<1x2xf32, #tpu.memory_space<vmem>>, vector<1x2xf32>
      %c0_38 = arith.constant 0 : index
      %c0_39 = arith.constant 0 : index
      %301 = vector.load %arg9[%c0_38, %c0_39] : memref<1x2xf32, #tpu.memory_space<vmem>>, vector<1x2xf32>
      %c0_40 = arith.constant 0 : index
      %c0_41 = arith.constant 0 : index
      %302 = vector.load %arg10[%c0_40, %c0_41] : memref<1x2xf32, #tpu.memory_space<vmem>>, vector<1x2xf32>
      %c0_42 = arith.constant 0 : index
      %c0_43 = arith.constant 0 : index
      %303 = vector.load %arg11[%c0_42, %c0_43] : memref<1x2xf32, #tpu.memory_space<vmem>>, vector<1x2xf32>
      %304 = arith.mulf %302, %303 : vector<1x2xf32>
      %305 = arith.mulf %301, %300 : vector<1x2xf32>
      %306 = arith.subf %304, %305 : vector<1x2xf32>
      %307 = arith.mulf %306, %306 : vector<1x2xf32>
      %c0_44 = arith.constant 0 : index
      %c0_45 = arith.constant 0 : index
      %308 = vector.load %arg7[%c0_44, %c0_45] : memref<1x2xf32, #tpu.memory_space<vmem>>, vector<1x2xf32>
      tpu.vector_store %arg7[%c0_44, %c0_45], %307 {strides = array<i32>} : memref<1x2xf32, #tpu.memory_space<vmem>>, vector<1x2xf32>,
    } else {
    }
    return
  }
  func.func @transform_0(%arg0: i32, %arg1: i32) -> (i32, i32) {
    %c0_i32 = arith.constant 0 : i32
    return %arg1, %arg0 : i32, i32
  }
  func.func @transform_1(%arg0: i32, %arg1: i32) -> (i32, i32) {
    %c0_i32 = arith.constant 0 : i32
    return %arg1, %arg0 : i32, i32
  }
  func.func @transform_2(%arg0: i32, %arg1: i32) -> (i32, i32) {
    %c0_i32 = arith.constant 0 : i32
    %c0_i32_0 = arith.constant 0 : i32
    return %c0_i32, %arg0 : i32, i32
  }
  func.func @transform_3(%arg0: i32, %arg1: i32) -> (i32, i32) {
    %c0_i32 = arith.constant 0 : i32
    %c0_i32_0 = arith.constant 0 : i32
    return %c0_i32, %arg0 : i32, i32
  }
  func.func @transform_4(%arg0: i32, %arg1: i32) -> (i32, i32, i32) {
    %c0_i32 = arith.constant 0 : i32
    %c0_i32_0 = arith.constant 0 : i32
    return %arg1, %c0_i32, %arg0 : i32, i32, i32
  }
  func.func @transform_5(%arg0: i32, %arg1: i32) -> (i32, i32) {
    %c0_i32 = arith.constant 0 : i32
    %c0_i32_0 = arith.constant 0 : i32
    return %c0_i32, %arg0 : i32, i32
  }
}

</mosaic_0001>

<bundles_post_ra>
// kernel: tpu_custom_call.1
= control target key start
LH: loop header
LB: loop body
LE: loop exit
PB: predicated region body
PF: predicated region fallthrough
CT: control target
= control target key end

     0   :  { %vm25_vm0 = vcmask 8192   ;;  %v541_v1 = vmov 0.0   ;;  %s950_s0 = inlined_call_operand.vmem [shape: f32[16,2], index: 0, kind: input, shape index: {}]   ;;  %s951_s1 = inlined_call_operand.vmem [shape: f32[16,2], index: 1, kind: input, shape index: {}]   ;;  %s952_s2 = inlined_call_operand.vmem [shape: f32[16,2], index: 2, kind: input, shape index: {}]   ;;  %s953_s3 = inlined_call_operand.vmem [shape: f32[16,2], index: 3, kind: input, shape index: {}]   ;;  %s954_s4 = inlined_call_operand.vmem [shape: f32[16,16,2], index: 4, kind: input, shape index: {}]   ;;  %s955_s5 = inlined_call_operand.hbm [shape: f32[1,2], index: 5, kind: output, shape index: {}]  }
   0x1   :  { %v576_v0 = vld [vmem:[%s954_s4] sm:$0xff]  ;;  %26 = vst.msk [vmem:[#allocation2] sm:$0x1] %vm25_vm0, %v541_v1  ;;  %27 = vst.msk [vmem:[#allocation3] sm:$0x1] %vm25_vm0, %v541_v1  ;;  %v585_v2 = vld [vmem:[%s954_s4 + $0x8] sm:$0xff] }
   0x2   :  { %28 = vst.msk [vmem:[#allocation4] sm:$0x1] %vm25_vm0, %v541_v1  ;;  %29 = vst.msk [vmem:[#allocation5] sm:$0x1] %vm25_vm0, %v541_v1  ;;  %v453_v3 = vld [vmem:[%s950_s0] ss:$0 sm:$0xff] }
   0x3   :  { %v593_v4 = vld [vmem:[%s954_s4 + $0x10] sm:$0xff]  ;;  %v42_v5 = vmul.f32 %v453_v3, %v576_v0  ;;  %v43_v6 = vmul.f32 %v453_v3, %v585_v2  ;;  %v600_v7 = vld [vmem:[%s954_s4 + $0x18] sm:$0xff]  ;;  %v457_v8 = vld [vmem:[%s950_s0 + $0x1] ss:$0 sm:$0xff] }
   0x4   :  { %v608_v9 = vld [vmem:[%s954_s4 + $0x20] sm:$0xff]  ;;  %v63_v10 = vmul.f32 %v457_v8, %v593_v4  ;;  %v64_v11 = vmul.f32 %v457_v8, %v600_v7  ;;  %v615_v12 = vld [vmem:[%s954_s4 + $0x28] sm:$0xff]  ;;  %v623_v14 = vld [vmem:[%s954_s4 + $0x30] sm:$0xff] }
   0x5   :  { %v461_v13 = vld [vmem:[%s950_s0 + $0x2] ss:$0 sm:$0xff]  ;;  %v630_v17 = vld [vmem:[%s954_s4 + $0x38] sm:$0xff]  ;;  %v465_v18 = vld [vmem:[%s950_s0 + $0x3] ss:$0 sm:$0xff] }
   0x6   :  { %v84_v15 = vmul.f32 %v461_v13, %v608_v9  ;;  %v85_v16 = vmul.f32 %v461_v13, %v615_v12  ;;  %v638_v19 = vld [vmem:[%s954_s4 + $0x40] sm:$0xff]  ;;  %v65_v20 = vadd.f32 %v63_v10, %v42_v5  ;;  %v66_v21 = vadd.f32 %v64_v11, %v43_v6  ;;  %v645_v24 = vld [vmem:[%s954_s4 + $0x48] sm:$0xff]  ;;  %v653_v26 = vld [vmem:[%s954_s4 + $0x50] sm:$0xff] }
   0x7   :  { %v105_v22 = vmul.f32 %v465_v18, %v623_v14  ;;  %v106_v23 = vmul.f32 %v465_v18, %v630_v17  ;;  %v469_v25 = vld [vmem:[%s950_s0 + $0x4] ss:$0 sm:$0xff]  ;;  %v658_v27 = vld [vmem:[%s954_s4 + $0x58] sm:$0xff]  ;;  %v473_v28 = vld [vmem:[%s950_s0 + $0x5] ss:$0 sm:$0xff] }
   0x8   :  { %v86_v29 = vadd.f32 %v84_v15, %v65_v20  ;;  %v87_v30 = vadd.f32 %v85_v16, %v66_v21  ;;  %v126_v31 = vmul.f32 %v469_v25, %v638_v19  ;;  %v127_v32 = vmul.f32 %v469_v25, %v645_v24  ;;  %v668_v33 = vld [vmem:[%s954_s4 + $0x60] sm:$0xff]  ;;  %v673_v34 = vld [vmem:[%s954_s4 + $0x68] sm:$0xff]  ;;  %v683_v40 = vld [vmem:[%s954_s4 + $0x70] sm:$0xff] }
   0x9   :  { %v477_v35 = vld [vmem:[%s950_s0 + $0x6] ss:$0 sm:$0xff]  ;;  %v147_v38 = vmul.f32 %v473_v28, %v653_v26  ;;  %v148_v39 = vmul.f32 %v473_v28, %v658_v27  ;;  %v688_v41 = vld [vmem:[%s954_s4 + $0x78] sm:$0xff]  ;;  %v481_v42 = vld [vmem:[%s950_s0 + $0x7] ss:$0 sm:$0xff] }
   0xa   :  { %v107_v36 = vadd.f32 %v105_v22, %v86_v29  ;;  %v108_v37 = vadd.f32 %v106_v23, %v87_v30  ;;  %v168_v45 = vmul.f32 %v477_v35, %v668_v33  ;;  %v169_v46 = vmul.f32 %v477_v35, %v673_v34  ;;  %v698_v47 = vld [vmem:[%s954_s4 + $0x80] sm:$0xff]  ;;  %v703_v48 = vld [vmem:[%s954_s4 + $0x88] sm:$0xff]  ;;  %v713_v54 = vld [vmem:[%s954_s4 + $0x90] sm:$0xff] }
   0xb   :  { %v485_v49 = vld [vmem:[%s950_s0 + $0x8] ss:$0 sm:$0xff]  ;;  %v189_v52 = vmul.f32 %v481_v42, %v683_v40  ;;  %v190_v53 = vmul.f32 %v481_v42, %v688_v41  ;;  %v718_v55 = vld [vmem:[%s954_s4 + $0x98] sm:$0xff]  ;;  %v489_v56 = vld [vmem:[%s950_s0 + $0x9] ss:$0 sm:$0xff] }
   0xc   :  { %v128_v43 = vadd.f32 %v126_v31, %v107_v36  ;;  %v129_v44 = vadd.f32 %v127_v32, %v108_v37  ;;  %v210_v59 = vmul.f32 %v485_v49, %v698_v47  ;;  %v211_v60 = vmul.f32 %v485_v49, %v703_v48  ;;  %v728_v61 = vld [vmem:[%s954_s4 + $0xa0] sm:$0xff]  ;;  %v733_v62 = vld [vmem:[%s954_s4 + $0xa8] sm:$0xff]  ;;  %v743_v8 = vld [vmem:[%s954_s4 + $0xb0] sm:$0xff] }
   0xd   :  { %v493_v63 = vld [vmem:[%s950_s0 + $0xa] ss:$0 sm:$0xff]  ;;  %v231_v5 = vmul.f32 %v489_v56, %v713_v54  ;;  %v232_v6 = vmul.f32 %v489_v56, %v718_v55  ;;  %v748_v10 = vld [vmem:[%s954_s4 + $0xb8] sm:$0xff]  ;;  %v497_v11 = vld [vmem:[%s950_s0 + $0xb] ss:$0 sm:$0xff] }
   0xe   :  { %v149_v50 = vadd.f32 %v147_v38, %v128_v43  ;;  %v150_v51 = vadd.f32 %v148_v39, %v129_v44  ;;  %v252_v13 = vmul.f32 %v493_v63, %v728_v61  ;;  %v253_v15 = vmul.f32 %v493_v63, %v733_v62  ;;  %v454_v16 = vld [vmem:[%s951_s1] ss:$0 sm:$0xff]  ;;  %v458_v18 = vld [vmem:[%s951_s1 + $0x1] ss:$0 sm:$0xff]  ;;  %v462_v20 = vld [vmem:[%s951_s1 + $0x2] ss:$0 sm:$0xff] }
   0xf   :  { %v50_v23 = vmul.f32 %v454_v16, %v576_v0  ;;  %v51_v25 = vmul.f32 %v454_v16, %v585_v2  ;;  %v466_v28 = vld [vmem:[%s951_s1 + $0x3] ss:$0 sm:$0xff]  ;;  %v777_v30 = vld [vmem:[%s954_s4 + $0xc8] sm:$0xff]  ;;  %v71_v2 = vmul.f32 %v458_v18, %v593_v4  ;;  %v72_v31 = vmul.f32 %v458_v18, %v600_v7  ;;  %v470_v42 = vld [vmem:[%s951_s1 + $0x4] ss:$0 sm:$0xff] }
  0x10   :  { %v170_v57 = vadd.f32 %v168_v45, %v149_v50  ;;  %v171_v58 = vadd.f32 %v169_v46, %v150_v51  ;;  %v772_v29 = vld [vmem:[%s954_s4 + $0xc0] sm:$0xff]  ;;  %v501_v0 = vld [vmem:[%s950_s0 + $0xc] ss:$0 sm:$0xff]  ;;  %v92_v32 = vmul.f32 %v462_v20, %v608_v9  ;;  %v93_v35 = vmul.f32 %v462_v20, %v615_v12  ;;  %v794_v4 = vld [vmem:[%s954_s4 + $0xd0] sm:$0xff] }
  0x11   :  { %v273_v38 = vmul.f32 %v497_v11, %v743_v8  ;;  %v274_v39 = vmul.f32 %v497_v11, %v748_v10  ;;  %v799_v7 = vld [vmem:[%s954_s4 + $0xd8] sm:$0xff]  ;;  %v505_v9 = vld [vmem:[%s950_s0 + $0xd] ss:$0 sm:$0xff]  ;;  %v73_v12 = vadd.f32 %v71_v2, %v50_v23  ;;  %v74_v43 = vadd.f32 %v72_v31, %v51_v25 }
  0x12   :  { %v191_v1 = vadd.f32 %v189_v52, %v170_v57  ;;  %v192_v3 = vadd.f32 %v190_v53, %v171_v58  ;;  %v113_v44 = vmul.f32 %v466_v28, %v623_v14  ;;  %v114_v45 = vmul.f32 %v466_v28, %v630_v17  ;;  %v811_v52 = vld [vmem:[%s954_s4 + $0xe0] sm:$0xff]  ;;  %v819_v14 = vld [vmem:[%s954_s4 + $0xe8] sm:$0xff] }
  0x13   :  { %v294_v50 = vmul.f32 %v501_v0, %v772_v29  ;;  %v295_v51 = vmul.f32 %v501_v0, %v777_v30  ;;  %v474_v53 = vld [vmem:[%s951_s1 + $0x5] ss:$0 sm:$0xff]  ;;  %v509_v17 = vld [vmem:[%s950_s0 + $0xe] ss:$0 sm:$0xff]  ;;  %v94_v56 = vadd.f32 %v92_v32, %v73_v12  ;;  %v95_v57 = vadd.f32 %v93_v35, %v74_v43 }
  0x14   :  { %v212_v21 = vadd.f32 %v210_v59, %v191_v1  ;;  %v213_v22 = vadd.f32 %v211_v60, %v192_v3  ;;  %v134_v58 = vmul.f32 %v470_v42, %v638_v19  ;;  %v135_v59 = vmul.f32 %v470_v42, %v645_v24 }
  0x16   :  { %v233_v36 = vadd.f32 %v231_v5, %v212_v21  ;;  %v234_v37 = vadd.f32 %v232_v6, %v213_v22 }
  0x18   :  { %v254_v46 = vadd.f32 %v252_v13, %v233_v36  ;;  %v255_v49 = vadd.f32 %v253_v15, %v234_v37 }
  0x19   :  { %10 = vsyncpa [#allocation7], 0  ;;  %v315_v1 = vmul.f32 %v505_v9, %v794_v4  ;;  %v316_v3 = vmul.f32 %v505_v9, %v799_v7  ;;  %v478_v5 = vld [vmem:[%s951_s1 + $0x6] ss:$0 sm:$0xff]  ;;  %v834_v6 = vld [vmem:[%s954_s4 + $0xf0] sm:$0xff]  ;;  %v115_v11 = vadd.f32 %v113_v44, %v94_v56  ;;  %v116_v13 = vadd.f32 %v114_v45, %v95_v57 }
  0x1a   :  { %v275_v60 = vadd.f32 %v273_v38, %v254_v46  ;;  %v276_v63 = vadd.f32 %v274_v39, %v255_v49  ;;  %v839_v19 = vld [vmem:[%s954_s4 + $0xf8] sm:$0xff]  ;;  %v513_v24 = vld [vmem:[%s950_s0 + $0xf] ss:$0 sm:$0xff]  ;;  %v155_v15 = vmul.f32 %v474_v53, %v653_v26  ;;  %v156_v16 = vmul.f32 %v474_v53, %v658_v27  ;;  %v482_v23 = vld [vmem:[%s951_s1 + $0x7] ss:$0 sm:$0xff] }
  0x1b   :  { %v336_v21 = vmul.f32 %v509_v17, %v811_v52  ;;  %v337_v22 = vmul.f32 %v509_v17, %v819_v14  ;;  %v136_v25 = vadd.f32 %v134_v58, %v115_v11  ;;  %v137_v28 = vadd.f32 %v135_v59, %v116_v13  ;;  %v486_v35 = vld [vmem:[%s951_s1 + $0x8] ss:$0 sm:$0xff]  ;;  %v494_v12 = vld [vmem:[%s951_s1 + $0xa] ss:$0 sm:$0xff]  ;;  %v498_v56 = vld [vmem:[%s951_s1 + $0xb] ss:$0 sm:$0xff] }
  0x1c   :  { %v296_v18 = vadd.f32 %v294_v50, %v275_v60  ;;  %v297_v20 = vadd.f32 %v295_v51, %v276_v63  ;;  %v176_v0 = vmul.f32 %v478_v5, %v668_v33  ;;  %v177_v2 = vmul.f32 %v478_v5, %v673_v34  ;;  %v490_v33 = vld [vmem:[%s951_s1 + $0x9] ss:$0 sm:$0xff]  ;;  %v866_v34 = vld [vmem:[%s952_s2] sm:$0xff] }
  0x1d   :  { %v357_v27 = vmul.f32 %v513_v24, %v834_v6  ;;  %v358_v32 = vmul.f32 %v513_v24, %v839_v19  ;;  %v157_v36 = vadd.f32 %v155_v15, %v136_v25  ;;  %v158_v37 = vadd.f32 %v156_v16, %v137_v28  ;;  %v884_v43 = vld [vmem:[%s953_s3 + $0x8] sm:$0xff] }
  0x1e   :  { %v317_v31 = vadd.f32 %v315_v1, %v296_v18  ;;  %v318_v26 = vadd.f32 %v316_v3, %v297_v20  ;;  %v197_v38 = vmul.f32 %v482_v23, %v683_v40  ;;  %v198_v39 = vmul.f32 %v482_v23, %v688_v41  ;;  %v874_v40 = vld [vmem:[%s952_s2 + $0x8] sm:$0xff]  ;;  %v879_v41 = vld [vmem:[%s953_s3] sm:$0xff] }
  0x1f   :  { %vm372_vm1 = vcmask 15360   ;;  %v178_v44 = vadd.f32 %v176_v0, %v157_v36  ;;  %v179_v45 = vadd.f32 %v177_v2, %v158_v37  ;;  %v218_v46 = vmul.f32 %v486_v35, %v698_v47  ;;  %v510_v0 = vld [vmem:[%s951_s1 + $0xe] ss:$0 sm:$0xff] }
  0x20   :  { %v338_v42 = vadd.f32 %v336_v21, %v317_v31  ;;  %v339_v9 = vadd.f32 %v337_v22, %v318_v26  ;;  %v219_v49 = vmul.f32 %v486_v35, %v703_v48  ;;  %v239_v53 = vmul.f32 %v490_v33, %v713_v54 }
  0x21   :  { %v240_v17 = vmul.f32 %v490_v33, %v718_v55  ;;  %v199_v57 = vadd.f32 %v197_v38, %v178_v44  ;;  %v200_v58 = vadd.f32 %v198_v39, %v179_v45  ;;  %v260_v59 = vmul.f32 %v494_v12, %v728_v61  ;;  %v502_v61 = vld [vmem:[%s951_s1 + $0xc] ss:$0 sm:$0xff] }
  0x22   :  { %v359_v50 = vadd.f32 %v357_v27, %v338_v42  ;;  %v360_v51 = vadd.f32 %v358_v32, %v339_v9  ;;  %v261_v60 = vmul.f32 %v494_v12, %v733_v62  ;;  %v281_v3 = vmul.f32 %v498_v56, %v743_v8  ;;  %v506_v8 = vld [vmem:[%s951_s1 + $0xd] ss:$0 sm:$0xff] }
  0x23   :  { %v220_v1 = vadd.f32 %v218_v46, %v199_v57  ;;  %v221_v55 = vadd.f32 %v219_v49, %v200_v58  ;;  %v282_v5 = vmul.f32 %v498_v56, %v748_v10  ;;  %v302_v10 = vmul.f32 %v502_v61, %v772_v29  ;;  %v514_v29 = vld [vmem:[%s951_s1 + $0xf] ss:$0 sm:$0xff]  ;;  %s542_s1 = smov [#allocation6]  }
  0x24   :  { %v370_v47 = vmul.f32 %v359_v50, %v866_v34  ;;  %v371_v48 = vmul.f32 %v360_v51, %v874_v40  ;;  %v386_v63 = vmul.f32 %v359_v50, %v879_v41  ;;  %v387_v54 = vmul.f32 %v360_v51, %v884_v43  ;;  %v369_v51 = vld [vmem:[#allocation2] sm:$0x1]  ;;  %s445_s25 = sshll.u32 %s542_s1, 4  ;;  %s446_s25 = int_to_ptr.vmem [resolvable:$true] %s445_s25 }
  0x25   :  { %v241_v18 = vadd.f32 %v239_v53, %v220_v1  ;;  %v242_v20 = vadd.f32 %v240_v17, %v221_v55  ;;  %v303_v21 = vmul.f32 %v502_v61, %v777_v30  ;;  %v323_v2 = vmul.f32 %v506_v8, %v794_v4  ;;  %s517_s26 = scalar_lea.vmem %s446_s25, 16  ;;  %s521_s27 = scalar_lea.vmem %s446_s25, 32 }
  0x26   :  { %v373_v62 = vsel %vm372_vm1, %v370_v47, 0.0  ;;  %v374_v24 = vsel %vm372_vm1, %v371_v48, 0.0  ;;  %v388_v11 = vsel %vm372_vm1, %v386_v63, 0.0  ;;  %v389_v13 = vsel %vm372_vm1, %v387_v54, 0.0  ;;  %p518_p0 = scmp.ne.s32.totalorder %s446_s25, %s517_s26  ;;  %p522_p1 = scmp.lt.s32.totalorder %s446_s25, %s446_s25 }
  0x27   :  { %v375_v15 = vadd.f32 %v374_v24, %v373_v62  ;;  %v390_v16 = vadd.f32 %v389_v13, %v388_v11  ;;  %v262_v25 = vadd.f32 %v260_v59, %v241_v18  ;;  %v263_v28 = vadd.f32 %v261_v60, %v242_v20  ;;  %v399_v11 = vld [vmem:[#allocation4] sm:$0x1]  ;;  %p523_p2 = scmp.lt.s32.totalorder %s521_s27, %s517_s26 }
  0x28   :  { %v324_v31 = vmul.f32 %v506_v8, %v799_v7  ;;  %v344_v30 = vmul.f32 %v510_v0, %v811_v52  ;;  %v345_v36 = vmul.f32 %v510_v0, %v819_v14  ;;  %v365_v4 = vmul.f32 %v514_v29, %v834_v6  ;;  %v385_v52 = vld [vmem:[#allocation3] sm:$0x1] }
  0x29   :  { %v376_v22 = vrot.slane %v375_v15, 4  ;;  %v391_v23 = vrot.slane %v390_v16, 4  ;;  %v283_v32 = vadd.f32 %v281_v3, %v262_v25  ;;  %v284_v35 = vadd.f32 %v282_v5, %v263_v28  ;;  %p524_p3 = por %p523_p2, %p522_p1 }
  0x2a   :  { %v366_v7 = vmul.f32 %v514_v29, %v839_v19 }
  0x2b   :  { %v377_v26 = vadd.f32 %v376_v22, %v375_v15  ;;  %v392_v27 = vadd.f32 %v391_v23, %v390_v16  ;;  %v304_v39 = vadd.f32 %v302_v10, %v283_v32  ;;  %v305_v33 = vadd.f32 %v303_v21, %v284_v35  ;;  %v413_v16 = vld [vmem:[#allocation5] sm:$0x1]  ;;  %p525_p4 = pnand %p524_p3, %p518_p0 }
  0x2d   :  { %v378_v37 = vrot.slane %v377_v26, 2  ;;  %v393_v38 = vrot.slane %v392_v27, 2  ;;  %v325_v12 = vadd.f32 %v323_v2, %v304_v39  ;;  %v326_v44 = vadd.f32 %v324_v31, %v305_v33 }
  0x2f   :  { %v379_v42 = vadd.f32 %v378_v37, %v377_v26  ;;  %v394_v9 = vadd.f32 %v393_v38, %v392_v27  ;;  %v346_v49 = vadd.f32 %v344_v30, %v325_v12  ;;  %v347_v50 = vadd.f32 %v345_v36, %v326_v44 }
  0x31   :  { %v380_v45 = vrot.slane %v379_v42, 1  ;;  %v395_v46 = vrot.slane %v394_v9, 1  ;;  %v367_v17 = vadd.f32 %v365_v4, %v346_v49  ;;  %v368_v56 = vadd.f32 %v366_v7, %v347_v50 }
  0x33   :  { %v381_v53 = vadd.f32 %v380_v45, %v379_v42  ;;  %v396_v14 = vadd.f32 %v395_v46, %v394_v9  ;;  %v400_v6 = vmul.f32 %v367_v17, %v866_v34  ;;  %v401_v19 = vmul.f32 %v368_v56, %v874_v40 }
  0x34   :  { %v414_v59 = vmul.f32 %v367_v17, %v879_v41  ;;  %v415_v60 = vmul.f32 %v368_v56, %v884_v43 }
  0x35   :  { %v382_v57 = vadd.f32 %v381_v53, %v369_v51  ;;  %v397_v58 = vadd.f32 %v396_v14, %v385_v52  ;;  %v402_v47 = vsel %vm372_vm1, %v400_v6, 0.0  ;;  %v403_v48 = vsel %vm372_vm1, %v401_v19, 0.0 }
  0x36   :  { %v404_v63 = vadd.f32 %v403_v48, %v402_v47  ;;  %v416_v54 = vsel %vm372_vm1, %v414_v59, 0.0  ;;  %v417_v1 = vsel %vm372_vm1, %v415_v60, 0.0 }
  0x37   :  { %384 = vst.msk [vmem:[#allocation2] sm:$0x1] %vm25_vm0, %v382_v57  ;;  %398 = vst.msk [vmem:[#allocation3] sm:$0x1] %vm25_vm0, %v397_v58  ;;  %v418_v34 = vadd.f32 %v417_v1, %v416_v54 }
  0x38   :  { %v405_v55 = vrot.slane %v404_v63, 4 }
  0x39   :  { %v419_v40 = vrot.slane %v418_v34, 4 }
  0x3a   :  { %v406_v3 = vadd.f32 %v405_v55, %v404_v63 }
  0x3b   :  { %v420_v41 = vadd.f32 %v419_v40, %v418_v34 }
  0x3c   :  { %v407_v5 = vrot.slane %v406_v3, 2 }
  0x3d   :  { %v421_v43 = vrot.slane %v420_v41, 2 }
  0x3e   :  { %v408_v61 = vadd.f32 %v407_v5, %v406_v3  ;;  %v430_v10 = vld [vmem:[#allocation2] sm:$0x1]  ;;  %v431_v21 = vld [vmem:[#allocation3] sm:$0x1] }
  0x3f   :  { %v422_v62 = vadd.f32 %v421_v43, %v420_v41  ;;  %v435_v23 = vmul.f32 %v431_v21, %v430_v10 }
  0x40   :  { %v409_v24 = vrot.slane %v408_v61, 1 }
  0x41   :  { %v423_v13 = vrot.slane %v422_v62, 1 }
  0x42   :  { %v410_v15 = vadd.f32 %v409_v24, %v408_v61 }
  0x43   :  { %v424_v18 = vadd.f32 %v423_v13, %v422_v62 }
  0x44   :  { %v411_v20 = vadd.f32 %v410_v15, %v399_v11 }
  0x45   :  { %v425_v8 = vadd.f32 %v424_v18, %v413_v16 }
  0x46   :  { %412 = vst.msk [vmem:[#allocation4] sm:$0x1] %vm25_vm0, %v411_v20 }
  0x47   :  { %426 = vst.msk [vmem:[#allocation5] sm:$0x1] %vm25_vm0, %v425_v8 }
  0x4d   :  { %v432_v22 = vld [vmem:[#allocation4] sm:$0x1] }
  0x4e   :  { %v433_v25 = vld [vmem:[#allocation5] sm:$0x1] }
  0x4f   :  { %v434_v28 = vmul.f32 %v433_v25, %v432_v22 }
  0x51   :  { %v436_v0 = vsub.f32 %v434_v28, %v435_v23 }
  0x53   :  { %v437_v2 = vmul.f32 %v436_v0, %v436_v0 }
  0x55   :  { %438 = vst.msk [vmem:[#allocation6] sm:$0x1] %vm25_vm0, %v437_v2 }
  0x56   :  { %528 = shalt.err (!%p525_p4)
}
  0x57   :  { %s529_s0 = scalar_lea.hbm %s955_s5, 16 }
  0x58   :  { %p530_p5 = scmp.ne.s32.totalorder %s955_s5, %s529_s0  ;;  %p533_p6 = scmp.lt.u32.totalorder %s529_s0, %s955_s5 }
  0x5a   :  { %p535_p7 = pnand %p533_p6, %p530_p5 }
  0x5c   :  { %538 = shalt.err (!%p535_p7)
}
  0x5d   :  { %448 = dma.vmem_to_hbm [thread:$0]  %s446_s25, 16, %s955_s5, [#allocation7]  }
  0x5e   :  { %539 = dma.done.wait [#allocation7], 16  }
  0x5f   :  { %540 = vsyncadd [#allocation7], 4294967280 }
  0x60   :  { %452 = vsyncpa [#allocation7], 1 }

</bundles_post_ra>
